<compile_context>
chip_gen: v7x
topology: tpu7x:2x2x1
jax: 0.10.0
libtpu: 0.0.40
codegen_flags: <defaults>
</compile_context>

<pallas_src>
import math

import jax
import jax.numpy as jnp
from jax.experimental import pallas as pl
from jax.experimental.pallas import tpu as pltpu


def build_pe(d_model: int, max_len: int = 5000) -> jnp.ndarray:
    """Deterministic buffer identical to PositionalEncoding.__init__ (fp32)."""
    position = jnp.arange(0, max_len, dtype=jnp.float32)[:, None]            # (L, 1)
    div_term = jnp.exp(
        jnp.arange(0, d_model, 2, dtype=jnp.float32) * (-math.log(10000.0) / d_model)
    )                                                                         # (ceil(D/2),)
    pe = jnp.zeros((max_len, d_model), dtype=jnp.float32)
    pe = pe.at[:, 0::2].set(jnp.sin(position * div_term))
    # clip div_term for odd d_model (the PyTorch original would shape-error there)
    pe = pe.at[:, 1::2].set(jnp.cos(position * div_term[: d_model // 2]))
    return pe[None]                                                           # (1, L, D)


def _add_pe_kernel(x_ref, pe_ref, o_ref):
    # x_ref: (B, TILE)   pe_ref: (1, TILE) -- broadcasts over the batch rows.
    o_ref[...] = (x_ref[...] + pe_ref[...]).astype(o_ref.dtype)


def positional_encoding_forward(
    x: jnp.ndarray, pe: jnp.ndarray, *, target_tile_bytes: int = 1 << 20
) -> jnp.ndarray:
    """x: (B, S, D), pe: (1, max_len, D) fp32 -> (B, S, D)."""
    B, S, D = x.shape
    _, L, Dp = pe.shape
    assert Dp == D and S <= L
    flat = S * D

    # Lane-dense tile along the flattened (S*D) axis: multiple of 128, sized so
    # one x tile (B rows) is ~target_tile_bytes.
    itemsize = jnp.dtype(x.dtype).itemsize
    tile = max(128, (target_tile_bytes // max(1, B * itemsize)) // 128 * 128)
    tile = min(tile, flat)

    x_flat = x.reshape(B, flat)  # free row-major reshape

    if tile % 128 == 0:
        # Window straight into the full pe buffer -- no XLA pre-slice copy.
        # Tile t covers flattened elements [t*tile, (t+1)*tile), identical for x
        # and pe; a ragged last x tile is masked on the output store and the
        # corresponding extra pe lanes (valid rows >= S) are simply ignored.
        pe_flat = pe.reshape(1, L * D)
    else:
        # tile == flat and flat isn't lane-aligned: make the pe operand exactly
        # (1, flat) so the full-extent block is legal.
        pe_flat = pe[:, :S, :].reshape(1, flat)

    num_tiles = pl.cdiv(flat, tile)

    out_flat = pl.pallas_call(
        _add_pe_kernel,
        out_shape=jax.ShapeDtypeStruct((B, flat), x.dtype),
        grid_spec=pltpu.PrefetchScalarGridSpec(
            num_scalar_prefetch=0,
            grid=(num_tiles,),
            in_specs=[
                pl.BlockSpec((B, tile), lambda t: (0, t)),   # x
                pl.BlockSpec((1, tile), lambda t: (0, t)),   # pe (broadcast over B)
            ],
            out_specs=pl.BlockSpec((B, tile), lambda t: (0, t)),
        ),
        input_output_aliases={0: 0},  # donate x into the output
        compiler_params=pltpu.CompilerParams(
            dimension_semantics=("parallel",),
        ),
    )(x_flat, pe_flat)

    return out_flat.reshape(B, S, D)


if __name__ == "__main__":
    B, S, D = 2, 8, 32
    key = jax.random.PRNGKey(0)
    x = jax.random.normal(key, (B, S, D), dtype=jnp.float32)

    pe = build_pe(d_model=D, max_len=5000)

    # Reference computed before the (buffer-donating) kernel call.
    expected = x + pe[:, :S, :]

    fwd = jax.jit(positional_encoding_forward)
    out = fwd(x, pe)
    out = jax.block_until_ready(out)

    assert out.shape == (B, S, D)
    assert jnp.allclose(out, expected, atol=1e-6), "mismatch vs reference"

    print("KERNEL_OK")
</pallas_src>

<mosaic_0001>
module attributes {stable_mosaic.version = 11 : i64} {
  func.func @_add_pe_kernel(%arg0: i32, %arg1: memref<2x256xf32, #tpu.memory_space<vmem>>, %arg2: memref<1x256xf32, #tpu.memory_space<vmem>>, %arg3: memref<2x256xf32, #tpu.memory_space<vmem>>) attributes {dimension_semantics = [#tpu.dimension_semantics<parallel>], iteration_bounds = array<i64: 1>, scalar_prefetch = 0 : i64, scratch_operands = 0 : i64, tpu.core_type = #tpu.core_type<tc>, window_params = [{transform_indices = @transform_0, window_bounds = array<i64: 2, 256>}, {transform_indices = @transform_1, window_bounds = array<i64: 1, 256>}, {transform_indices = @transform_2, window_bounds = array<i64: 2, 256>}]} {
    %c0 = arith.constant 0 : index
    %c0_0 = arith.constant 0 : index
    %0 = vector.load %arg1[%c0, %c0_0] : memref<2x256xf32, #tpu.memory_space<vmem>>, vector<2x256xf32>
    %c0_1 = arith.constant 0 : index
    %c0_2 = arith.constant 0 : index
    %1 = vector.load %arg2[%c0_1, %c0_2] : memref<1x256xf32, #tpu.memory_space<vmem>>, vector<1x256xf32>
    %2 = vector.broadcast %1 : vector<1x256xf32> to vector<2x256xf32>
    %3 = arith.addf %0, %2 : vector<2x256xf32>
    %c0_3 = arith.constant 0 : index
    %c0_4 = arith.constant 0 : index
    %4 = vector.load %arg3[%c0_3, %c0_4] : memref<2x256xf32, #tpu.memory_space<vmem>>, vector<2x256xf32>
    tpu.vector_store %arg3[%c0_3, %c0_4], %3 {strides = array<i32>} : memref<2x256xf32, #tpu.memory_space<vmem>>, vector<2x256xf32>,
    return
  }
  func.func @transform_0(%arg0: i32) -> (i32, i32) {
    %c0_i32 = arith.constant 0 : i32
    %c0_i32_0 = arith.constant 0 : i32
    return %c0_i32, %arg0 : i32, i32
  }
  func.func @transform_1(%arg0: i32) -> (i32, i32) {
    %c0_i32 = arith.constant 0 : i32
    %c0_i32_0 = arith.constant 0 : i32
    return %c0_i32, %arg0 : i32, i32
  }
  func.func @transform_2(%arg0: i32) -> (i32, i32) {
    %c0_i32 = arith.constant 0 : i32
    %c0_i32_0 = arith.constant 0 : i32
    return %c0_i32, %arg0 : i32, i32
  }
}

</mosaic_0001>

<bundles_post_ra>
// kernel: positional_encoding_forward.1
= control target key start
LH: loop header
LB: loop body
LE: loop exit
PB: predicated region body
PF: predicated region fallthrough
CT: control target
= control target key end

     0   :  { %v14_v0 = vlaneseq  ;;  %v38_v1 = vmov 1983009808   ;;  %s63_s1 = inlined_call_operand.vmem [shape: f32[1,160000], index: 1, kind: input, shape index: {}]   ;;  %s64_s0 = inlined_call_operand.vmem [shape: f32[2,256], index: 0, kind: input, shape index: {}, may-alias: {0,2}]   ;;  %s65_s2 = inlined_call_operand.vmem [shape: f32[2,256], index: 2, kind: output, shape index: {}, may-alias: {0,2}]  }
   0x1   :  { %v24_v2 = vunpack.c.l.s4 %v38_v1  ;;  %v12_v4 = vld [vmem:[%s63_s1] sm:$0x3] }
   0x2   :  { %v15_v3 = vshrl.u32 %v14_v0, 7  ;;  %v11_v12 = vld [vmem:[%s64_s0] sm:$0xf] }
   0x3   :  { %v25_v5 = vunpack.c.0.s8 %v24_v2 }
   0x4   :  { %v16_v6 = vsub.s32 0, %v15_v3  ;;  %v20_v7 = vsub.s32 1, %v15_v3 }
   0x5   :  { %v28_v10 = vsub.s32 %v25_v5, %v15_v3 }
   0x6   :  { %v17_v8 = vrot.slane %v12_v4, %v16_v6  ;;  %v21_v9 = vrot.slane %v12_v4, %v20_v7 }
   0x8   :  { %v22_v11 = vcombine.low %v17_v8, %v21_v9 }
   0xa   :  { %v29_v13 = vrot.slane %v22_v11, %v28_v10 }
   0xc   :  { %v31_v14 = vadd.f32 %v29_v13, %v11_v12 }
   0xe   :  { %32 = vst [vmem:[%s65_s2] sm:$0xf] %v31_v14 }

</bundles_post_ra>
